<compile_context>
chip_gen: v7x
topology: tpu7x:2x2x1
jax: 0.10.0
libtpu: 0.0.40
codegen_flags: <defaults>
</compile_context>

<pallas_src>
import math

import jax
import jax.numpy as jnp
from jax.experimental import pallas as pl
from jax.experimental.pallas import tpu as pltpu

IN_CHANNELS = 556
HIDDEN_SIZE = 256
OUT_CHANNELS = 256

_SUBLANE = 16  # keep batch tiles 16-row aligned (bf16 sublane packing)


def _round_up(x, m):
    return ((x + m - 1) // m) * m


def gig_kernel(x_ref, w1_ref, b1_ref, w2_ref, b2_ref, o_ref):
    # x arrives as f32 straight from HBM; cast to bf16 on the VPU (hidden
    # under DMA/MXU) so the MXU runs bf16 x bf16 with f32 accumulation.
    x = x_ref[...].astype(jnp.bfloat16)
    h = jnp.dot(x, w1_ref[...], preferred_element_type=jnp.float32)
    h = h + b1_ref[...]                      # bias broadcast in f32
    # LeakyReLU(0.2): max(h, 0.2*h) == where(h > 0, h, 0.2*h) for slope in (0,1).
    h = jnp.maximum(h, 0.2 * h)
    # Dropout(p=0.2) -> identity at inference.
    out = jnp.dot(h.astype(jnp.bfloat16), w2_ref[...],
                  preferred_element_type=jnp.float32)
    out = out + b2_ref[...]
    # Dropout(p=0.3) -> identity at inference.
    o_ref[...] = out.astype(o_ref.dtype)


def _choose_tile_b(B, max_tile_b=1024, min_steps=4):
    """Batch tile: large enough to amortize per-step grid overhead, small
    enough to keep >= min_steps grid steps for large B (pipeline overlap and
    v7x 2-TensorCore sharding); always a multiple of 16."""
    tile = min(max_tile_b, max(256, _round_up(pl.cdiv(B, min_steps), _SUBLANE)))
    return min(tile, _round_up(B, _SUBLANE))


def gig_forward(x, w1, b1, w2, b2, *, max_tile_b=1024, training=False,
                out_dtype=jnp.bfloat16):
    """x: [B, Cin] f32; w1: [Cin, H]; b1: [1, H]; w2: [H, Cout]; b2: [1, Cout]."""
    # TODO(synk): training-mode dropout (stochastic masking) not implemented.
    assert not training, "GIG Pallas kernel implements the inference forward only"

    B, Cin = x.shape
    H = w1.shape[1]
    Cout = w2.shape[1]
    assert w1.shape[0] == Cin and w2.shape[0] == H

    # No wrapper-side padding or casting of x (kernel casts in-VMEM); batch is
    # never padded — a partial last block is masked by Pallas and rows are
    # independent, so valid outputs are unaffected.
    x = x.astype(jnp.float32)
    w1_bf = w1.astype(jnp.bfloat16)   # resident bf16 weights (~0.4 MiB total)
    w2_bf = w2.astype(jnp.bfloat16)
    b1_f = b1.reshape(1, H).astype(jnp.float32)
    b2_f = b2.reshape(1, Cout).astype(jnp.float32)

    tile_b = _choose_tile_b(B, max_tile_b=max_tile_b)
    grid = (pl.cdiv(B, tile_b),)

    out_bytes = jnp.dtype(out_dtype).itemsize
    cost = pl.CostEstimate(
        flops=2 * B * (Cin * H + H * Cout),
        transcendentals=0,
        bytes_accessed=(B * Cin * 4                   # x (f32, read once)
                        + (Cin * H + H * Cout) * 2    # weights (bf16)
                        + (H + Cout) * 4              # biases (f32)
                        + B * Cout * out_bytes),      # output
    )

    # Constant-index (resident) operands: single buffer, DMA'd once.
    resident = dict(pipeline_mode=pl.Buffered(buffer_count=1))

    return pl.pallas_call(
        gig_kernel,
        out_shape=jax.ShapeDtypeStruct((B, Cout), out_dtype),
        grid_spec=pltpu.PrefetchScalarGridSpec(
            num_scalar_prefetch=0,
            grid=grid,
            in_specs=[
                pl.BlockSpec((tile_b, Cin), lambda i: (i, 0)),          # x tile (f32)
                pl.BlockSpec((Cin, H), lambda i: (0, 0), **resident),   # W1 (bf16)
                pl.BlockSpec((1, H), lambda i: (0, 0), **resident),     # b1 (f32)
                pl.BlockSpec((H, Cout), lambda i: (0, 0), **resident),  # W2 (bf16)
                pl.BlockSpec((1, Cout), lambda i: (0, 0), **resident),  # b2 (f32)
            ],
            out_specs=pl.BlockSpec((tile_b, Cout), lambda i: (i, 0)),
        ),
        compiler_params=pltpu.CompilerParams(
            dimension_semantics=("parallel",),
        ),
        cost_estimate=cost,
    )(x, w1_bf, b1_f, w2_bf, b2_f)


def xavier_uniform(key, fan_in, fan_out, dtype=jnp.float32):
    # torch.nn.init.xavier_uniform_ on a weight of shape [out, in]:
    # bound = sqrt(6 / (fan_in + fan_out)). We store transposed [in, out].
    bound = math.sqrt(6.0 / (fan_in + fan_out))
    return jax.random.uniform(key, (fan_in, fan_out), dtype=dtype,
                              minval=-bound, maxval=bound)


if __name__ == "__main__":
    key = jax.random.PRNGKey(0)
    k_x, k_w1, k_w2 = jax.random.split(key, 3)

    B = 64  # small demo batch; one 64-row tile, single grid step
    x = jax.random.normal(k_x, (B, IN_CHANNELS), dtype=jnp.float32)

    w1 = xavier_uniform(k_w1, IN_CHANNELS, HIDDEN_SIZE)   # [556, 256]
    b1 = jnp.full((1, HIDDEN_SIZE), 0.01, dtype=jnp.float32)
    w2 = xavier_uniform(k_w2, HIDDEN_SIZE, OUT_CHANNELS)  # [256, 256]
    b2 = jnp.full((1, OUT_CHANNELS), 0.01, dtype=jnp.float32)

    out = gig_forward(x, w1, b1, w2, b2)
    out = jax.block_until_ready(out)

    # Reference in plain f32 JAX (inference-mode dropout). Kernel uses bf16
    # MXU operands with f32 accumulation and a bf16 output, so the tolerance
    # is loosened accordingly.
    h_ref = x @ w1 + b1
    h_ref = jnp.where(h_ref > 0, h_ref, 0.2 * h_ref)
    ref = h_ref @ w2 + b2

    assert out.shape == (B, OUT_CHANNELS)
    assert out.dtype == jnp.bfloat16
    err = float(jnp.max(jnp.abs(out.astype(jnp.float32) - ref)))
    assert err < 1e-1, err

    print("KERNEL_OK")
</pallas_src>

<mosaic_0001>
module attributes {stable_mosaic.version = 11 : i64} {
  func.func @gig_kernel(%arg0: i32, %arg1: memref<64x556xf32, #tpu.memory_space<vmem>>, %arg2: memref<556x256xbf16, #tpu.memory_space<vmem>>, %arg3: memref<1x256xf32, #tpu.memory_space<vmem>>, %arg4: memref<256x256xbf16, #tpu.memory_space<vmem>>, %arg5: memref<1x256xf32, #tpu.memory_space<vmem>>, %arg6: memref<64x256xbf16, #tpu.memory_space<vmem>>) attributes {dimension_semantics = [#tpu.dimension_semantics<parallel>], iteration_bounds = array<i64: 1>, scalar_prefetch = 0 : i64, scratch_operands = 0 : i64, tpu.core_type = #tpu.core_type<tc>, window_params = [{transform_indices = @transform_0, window_bounds = array<i64: 64, 556>}, {pipeline_mode = #tpu.pipeline_mode<synchronous>, transform_indices = @transform_1, window_bounds = array<i64: 556, 256>}, {pipeline_mode = #tpu.pipeline_mode<synchronous>, transform_indices = @transform_2, window_bounds = array<i64: 1, 256>}, {pipeline_mode = #tpu.pipeline_mode<synchronous>, transform_indices = @transform_3, window_bounds = array<i64: 256, 256>}, {pipeline_mode = #tpu.pipeline_mode<synchronous>, transform_indices = @transform_4, window_bounds = array<i64: 1, 256>}, {transform_indices = @transform_5, window_bounds = array<i64: 64, 256>}]} {
    %c0 = arith.constant 0 : index
    %c0_0 = arith.constant 0 : index
    %0 = vector.load %arg1[%c0, %c0_0] : memref<64x556xf32, #tpu.memory_space<vmem>>, vector<64x556xf32>
    %1 = arith.truncf %0 : vector<64x556xf32> to vector<64x556xbf16>
    %c0_1 = arith.constant 0 : index
    %c0_2 = arith.constant 0 : index
    %2 = vector.load %arg2[%c0_1, %c0_2] : memref<556x256xbf16, #tpu.memory_space<vmem>>, vector<556x256xbf16>
    %cst = arith.constant dense<0.000000e+00> : vector<64x256xf32>
    %3 = tpu.matmul %1, %2, %cst {dimension_numbers = #tpu.dot_dimension_numbers<[1], [0], [0], [1], [0, 0, 1, 1], [], []>} : vector<64x556xbf16>, vector<556x256xbf16>, vector<64x256xf32> -> vector<64x256xf32>
    %c0_3 = arith.constant 0 : index
    %c0_4 = arith.constant 0 : index
    %4 = vector.load %arg3[%c0_3, %c0_4] : memref<1x256xf32, #tpu.memory_space<vmem>>, vector<1x256xf32>
    %5 = vector.broadcast %4 : vector<1x256xf32> to vector<64x256xf32>
    %6 = arith.addf %3, %5 : vector<64x256xf32>
    %cst_5 = arith.constant 2.000000e-01 : f32
    %7 = vector.broadcast %cst_5 : f32 to vector<64x256xf32>
    %8 = arith.mulf %7, %6 : vector<64x256xf32>
    %9 = arith.maximumf %6, %8 : vector<64x256xf32>
    %10 = arith.truncf %9 : vector<64x256xf32> to vector<64x256xbf16>
    %c0_6 = arith.constant 0 : index
    %c0_7 = arith.constant 0 : index
    %11 = vector.load %arg4[%c0_6, %c0_7] : memref<256x256xbf16, #tpu.memory_space<vmem>>, vector<256x256xbf16>
    %cst_8 = arith.constant dense<0.000000e+00> : vector<64x256xf32>
    %12 = tpu.matmul %10, %11, %cst_8 {dimension_numbers = #tpu.dot_dimension_numbers<[1], [0], [0], [1], [0, 0, 1, 1], [], []>} : vector<64x256xbf16>, vector<256x256xbf16>, vector<64x256xf32> -> vector<64x256xf32>
    %c0_9 = arith.constant 0 : index
    %c0_10 = arith.constant 0 : index
    %13 = vector.load %arg5[%c0_9, %c0_10] : memref<1x256xf32, #tpu.memory_space<vmem>>, vector<1x256xf32>
    %14 = vector.broadcast %13 : vector<1x256xf32> to vector<64x256xf32>
    %15 = arith.addf %12, %14 : vector<64x256xf32>
    %16 = arith.truncf %15 : vector<64x256xf32> to vector<64x256xbf16>
    %c0_11 = arith.constant 0 : index
    %c0_12 = arith.constant 0 : index
    %17 = vector.load %arg6[%c0_11, %c0_12] : memref<64x256xbf16, #tpu.memory_space<vmem>>, vector<64x256xbf16>
    tpu.vector_store %arg6[%c0_11, %c0_12], %16 {strides = array<i32>} : memref<64x256xbf16, #tpu.memory_space<vmem>>, vector<64x256xbf16>,
    return
  }
  func.func @transform_0(%arg0: i32) -> (i32, i32) {
    %c0_i32 = arith.constant 0 : i32
    %c0_i32_0 = arith.constant 0 : i32
    return %arg0, %c0_i32 : i32, i32
  }
  func.func @transform_1(%arg0: i32) -> (i32, i32) {
    %c0_i32 = arith.constant 0 : i32
    %c0_i32_0 = arith.constant 0 : i32
    %c0_i32_1 = arith.constant 0 : i32
    return %c0_i32, %c0_i32_0 : i32, i32
  }
  func.func @transform_2(%arg0: i32) -> (i32, i32) {
    %c0_i32 = arith.constant 0 : i32
    %c0_i32_0 = arith.constant 0 : i32
    %c0_i32_1 = arith.constant 0 : i32
    return %c0_i32, %c0_i32_0 : i32, i32
  }
  func.func @transform_3(%arg0: i32) -> (i32, i32) {
    %c0_i32 = arith.constant 0 : i32
    %c0_i32_0 = arith.constant 0 : i32
    %c0_i32_1 = arith.constant 0 : i32
    return %c0_i32, %c0_i32_0 : i32, i32
  }
  func.func @transform_4(%arg0: i32) -> (i32, i32) {
    %c0_i32 = arith.constant 0 : i32
    %c0_i32_0 = arith.constant 0 : i32
    %c0_i32_1 = arith.constant 0 : i32
    return %c0_i32, %c0_i32_0 : i32, i32
  }
  func.func @transform_5(%arg0: i32) -> (i32, i32) {
    %c0_i32 = arith.constant 0 : i32
    %c0_i32_0 = arith.constant 0 : i32
    return %arg0, %c0_i32 : i32, i32
  }
}

</mosaic_0001>

<bundles_post_ra>
// kernel: tpu_custom_call.1
= control target key start
LH: loop header
LB: loop body
LE: loop exit
PB: predicated region body
PF: predicated region fallthrough
CT: control target
= control target key end

     0   :  { %10 = vsyncpa [#allocation3], 0  ;;  %s1748_s0 = inlined_call_operand.hbm [shape: f32[64,556], index: 0, kind: input, shape index: {}]   ;;  %s1749_s1 = inlined_call_operand.hbm [shape: bf16[556,256], index: 1, kind: input, shape index: {}]   ;;  %s1750_s2 = inlined_call_operand.vmem [shape: f32[1,256], index: 2, kind: input, shape index: {}]   ;;  %s1751_s3 = inlined_call_operand.hbm [shape: bf16[256,256], index: 3, kind: input, shape index: {}]   ;;  %s1752_s4 = inlined_call_operand.vmem [shape: f32[1,256], index: 4, kind: input, shape index: {}]   ;;  %s1753_s5 = inlined_call_operand.hbm [shape: bf16[64,256], index: 5, kind: output, shape index: {}]  }
   0x1   :  { %11 = vsyncpa [#allocation6], 0 }
   0x2   :  { %12 = vsyncpa [#allocation4], 0  ;;  %s1610_s18 = smov [#allocation5]   ;;  %s1516_s22 = scalar_lea.hbm %s1749_s1, 8960 }
   0x3   :  { %s30_s19 = sshll.u32 %s1610_s18, 4  ;;  %p1517_p0 = scmp.ne.s32.totalorder %s1749_s1, %s1516_s22  ;;  %s31_s19 = int_to_ptr.vmem [resolvable:$true] %s30_s19 }
   0x4   :  { %p1520_p1 = scmp.lt.u32.totalorder %s1516_s22, %s1749_s1 }
   0x6   :  { %p1522_p2 = pnand %p1520_p1, %p1517_p0 }
   0x8   :  { %1525 = shalt.err (!%p1522_p2)
}
   0x9   :  { %s1526_s27 = scalar_lea.vmem %s31_s19, 8960  ;;  %p1531_p4 = scmp.lt.s32.totalorder %s31_s19, %s31_s19 }
   0xa   :  { %p1527_p3 = scmp.ne.s32.totalorder %s31_s19, %s1526_s27  ;;  %p1532_p5 = scmp.lt.s32.totalorder %s1526_s27, %s1526_s27 }
   0xc   :  { %p1533_p6 = por %p1532_p5, %p1531_p4 }
   0xe   :  { %p1534_p7 = pnand %p1533_p6, %p1527_p3 }
  0x10   :  { %1537 = shalt.err (!%p1534_p7)
}
  0x11   :  { %s1611_s28 = smov 128   ;;  %s1612_s29 = smov 8  }
  0x12   :  { %36 = dma.hbm_to_vmem [thread:$0]  %s1749_s1, 8960, %s31_s19, [#allocation6], %s1611_s28, %s1611_s28, %s1612_s29  }
  0x13   :  { %s1613_s7 = smov [#allocation2]   ;;  %s1538_s11 = scalar_lea.hbm %s1748_s0, 5120 }
  0x14   :  { %s18_s8 = sshll.u32 %s1613_s7, 4  ;;  %p1539_p8 = scmp.ne.s32.totalorder %s1748_s0, %s1538_s11  ;;  %s19_s8 = int_to_ptr.vmem [resolvable:$true] %s18_s8 }
  0x15   :  { %p1542_p9 = scmp.lt.u32.totalorder %s1538_s11, %s1748_s0 }
  0x17   :  { %p1544_p10 = pnand %p1542_p9, %p1539_p8 }
  0x19   :  { %1547 = shalt.err (!%p1544_p10)
}
  0x1a   :  { %s1548_s16 = scalar_lea.vmem %s19_s8, 5120  ;;  %p1553_p12 = scmp.lt.s32.totalorder %s19_s8, %s19_s8 }
  0x1b   :  { %p1549_p11 = scmp.ne.s32.totalorder %s19_s8, %s1548_s16  ;;  %p1554_p13 = scmp.lt.s32.totalorder %s1548_s16, %s1548_s16 }
  0x1d   :  { %p1555_p0 = por %p1554_p13, %p1553_p12 }
  0x1f   :  { %p1556_p1 = pnand %p1555_p0, %p1549_p11 }
  0x21   :  { %1559 = shalt.err (!%p1556_p1)
}
  0x22   :  { %s1614_s1 = smov 640   ;;  %s1615_s17 = smov 40  }
  0x23   :  { %24 = dma.hbm_to_vmem [thread:$0]  %s1748_s0, 5120, %s19_s8, [#allocation3], %s1614_s1, %s1614_s1, %s1615_s17  }
  0x24   :  { %s1616_s20 = smov [#allocation7]   ;;  %s1560_s24 = scalar_lea.hbm %s1751_s3, 4096 }
  0x25   :  { %s44_s21 = sshll.u32 %s1616_s20, 4  ;;  %p1561_p2 = scmp.ne.s32.totalorder %s1751_s3, %s1560_s24  ;;  %s45_s21 = int_to_ptr.vmem [resolvable:$true] %s44_s21 }
  0x26   :  { %p1564_p3 = scmp.lt.u32.totalorder %s1560_s24, %s1751_s3 }
  0x28   :  { %p1566_p4 = pnand %p1564_p3, %p1561_p2 }
  0x2a   :  { %1569 = shalt.err (!%p1566_p4)
}
  0x2b   :  { %s1570_s6 = scalar_lea.vmem %s45_s21, 4096  ;;  %p1575_p6 = scmp.lt.s32.totalorder %s45_s21, %s45_s21 }
  0x2c   :  { %p1571_p5 = scmp.ne.s32.totalorder %s45_s21, %s1570_s6  ;;  %p1576_p7 = scmp.lt.s32.totalorder %s1570_s6, %s1570_s6 }
  0x2e   :  { %p1577_p8 = por %p1576_p7, %p1575_p6 }
  0x30   :  { %p1578_p9 = pnand %p1577_p8, %p1571_p5 }
  0x32   :  { %1581 = shalt.err (!%p1578_p9)
}
  0x33   :  { %50 = dma.hbm_to_vmem [thread:$0]  %s1751_s3, 4096, %s45_s21, [#allocation6], %s1611_s28, %s1611_s28, %s1612_s29  }
  0x34   :  { %1604 = dma.done.wait [#allocation3], 5120  }
  0x35   :  { %1605 = vsyncadd [#allocation3], 4294962176 }
  0x36   :  { %1606 = dma.done.wait [#allocation6], 13056  }
  0x37   :  { %1607 = vsyncadd [#allocation6], 4294954240  ;;  %v1363_v0 = vld [vmem:[#allocation5 + $0x104] ss:$8 sps:$4 sm:$0xff]   ;;  %v1365_v1 = vld [vmem:[#allocation5 + $0x100] ss:$8 sps:$4 sm:$0xff]  }
  0x38   :  { %646 = vmatprep.subr.bf16.mxu0 %v1363_v0  ;;  %v1366_v2 = vld [vmem:[#allocation5 + $0x114] ss:$8 sps:$4 sm:$0xff]   ;;  %v1368_v3 = vld [vmem:[#allocation5 + $0x110] ss:$8 sps:$4 sm:$0xff]   ;;  %v1369_v4 = vld [vmem:[#allocation5 + $0x124] ss:$8 sps:$4 sm:$0xff]  }
  0x39   :  { %647 = vmatpush1.bf16.msra.mxu0 %v1365_v1  ;;  %v1371_v5 = vld [vmem:[#allocation5 + $0x120] ss:$8 sps:$4 sm:$0xff]   ;;  %v1372_v6 = vld [vmem:[#allocation5 + $0x134] ss:$8 sps:$4 sm:$0xff]   ;;  %v1384_v7 = vld [vmem:[#allocation5 + $0x4] ss:$8 sps:$4 sm:$0xff]  }
  0x3a   :  { %648 = vmatprep.subr.bf16.mxu0 %v1366_v2  ;;  %v1374_v8 = vld [vmem:[#allocation5 + $0x130] ss:$8 sps:$4 sm:$0xff]   ;;  %v1375_v9 = vld [vmem:[#allocation5 + $0x144] ss:$8 sps:$4 sm:$0xff]   ;;  %v1388_v10 = vld [vmem:[#allocation5] ss:$8 sps:$4 sm:$0xff]   ;;  %573 = vmatprep.subr.bf16.mxu1 %v1384_v7 }
  0x3b   :  { %v1390_v11 = vld [vmem:[#allocation5 + $0x14] ss:$8 sps:$4 sm:$0xff]   ;;  %574 = vmatpush1.bf16.msra.mxu1 %v1388_v10  ;;  %v1377_v12 = vld [vmem:[#allocation5 + $0x140] ss:$8 sps:$4 sm:$0xff]   ;;  %v1394_v13 = vld [vmem:[#allocation5 + $0x10] ss:$8 sps:$4 sm:$0xff]  }
  0x3c   :  { %575 = vmatprep.subr.bf16.mxu1 %v1390_v11  ;;  %v1396_v14 = vld [vmem:[#allocation5 + $0x24] ss:$8 sps:$4 sm:$0xff]   ;;  %v1378_v15 = vld [vmem:[#allocation5 + $0x154] ss:$8 sps:$4 sm:$0xff]   ;;  %v1400_v16 = vld [vmem:[#allocation5 + $0x20] ss:$8 sps:$4 sm:$0xff]  }
  0x3d   :  { %649 = vmatpush1.bf16.msra.mxu0 %v1368_v3  ;;  %v1402_v17 = vld [vmem:[#allocation5 + $0x34] ss:$8 sps:$4 sm:$0xff]   ;;  %v1380_v18 = vld [vmem:[#allocation5 + $0x150] ss:$8 sps:$4 sm:$0xff]   ;;  %v1381_v19 = vld [vmem:[#allocation5 + $0x164] ss:$8 sps:$4 sm:$0xff]  }
  0x3e   :  { %650 = vmatprep.subr.bf16.mxu0 %v1369_v4  ;;  %v1406_v20 = vld [vmem:[#allocation5 + $0x30] ss:$8 sps:$4 sm:$0xff]   ;;  %v1408_v21 = vld [vmem:[#allocation5 + $0x44] ss:$8 sps:$4 sm:$0xff]   ;;  %v1383_v22 = vld [vmem:[#allocation5 + $0x160] ss:$8 sps:$4 sm:$0xff]  }
  0x3f   :  { %576 = vmatpush1.bf16.msra.mxu1 %v1394_v13  ;;  %v1386_v23 = vld [vmem:[#allocation5 + $0x174] ss:$8 sps:$4 sm:$0xff]   ;;  %v1412_v24 = vld [vmem:[#allocation5 + $0x40] ss:$8 sps:$4 sm:$0xff]   ;;  %v1389_v26 = vld [vmem:[#allocation5 + $0x170] ss:$8 sps:$4 sm:$0xff]  }
  0x40   :  { %577 = vmatprep.subr.bf16.mxu1 %v1396_v14  ;;  %v1414_v25 = vld [vmem:[#allocation5 + $0x54] ss:$8 sps:$4 sm:$0xff]   ;;  %v1392_v27 = vld [vmem:[#allocation5 + $0x184] ss:$8 sps:$4 sm:$0xff]   ;;  %v1418_v28 = vld [vmem:[#allocation5 + $0x50] ss:$8 sps:$4 sm:$0xff]  }
  0x41   :  { %651 = vmatpush1.bf16.msra.mxu0 %v1371_v5  ;;  %v1420_v29 = vld [vmem:[#allocation5 + $0x64] ss:$8 sps:$4 sm:$0xff]   ;;  %v1395_v30 = vld [vmem:[#allocation5 + $0x180] ss:$8 sps:$4 sm:$0xff]   ;;  %v1398_v31 = vld [vmem:[#allocation5 + $0x194] ss:$8 sps:$4 sm:$0xff]  }
  0x42   :  { %652 = vmatprep.subr.bf16.mxu0 %v1372_v6  ;;  %v1424_v32 = vld [vmem:[#allocation5 + $0x60] ss:$8 sps:$4 sm:$0xff]   ;;  %v66_v33 = vld [vmem:[#allocation2 + $0x18] sm:$0xff]  ;;  %v1404_v38 = vld [vmem:[#allocation5 + $0x1a4] ss:$8 sps:$4 sm:$0xff]   ;;  %vm566_vm0 = vcmask 1045504  }
  0x43   :  { %578 = vmatpush1.bf16.msra.mxu1 %v1400_v16  ;;  %v71_v34 = vld [vmem:[#allocation2 + $0x40] sm:$0xff]  ;;  %v1426_v35 = vld [vmem:[#allocation5 + $0x74] ss:$8 sps:$4 sm:$0xff]   ;;  %v1401_v37 = vld [vmem:[#allocation5 + $0x190] ss:$8 sps:$4 sm:$0xff]   ;;  %vm553_vm1 = vcmask 359424  }
  0x44   :  { %579 = vmatprep.subr.bf16.mxu1 %v1402_v17  ;;  %v106_v36 = vpack.c.bf16 %v71_v34, %v66_v33  ;;  %v1430_v39 = vld [vmem:[#allocation5 + $0x70] ss:$8 sps:$4 sm:$0xff]   ;;  %v1432_v40 = vld [vmem:[#allocation5 + $0x84] ss:$8 sps:$4 sm:$0xff]   ;;  %v1407_v41 = vld [vmem:[#allocation5 + $0x1a0] ss:$8 sps:$4 sm:$0xff]  }
  0x45   :  { %653 = vmatpush1.bf16.msra.mxu0 %v1374_v8  ;;  %v1410_v42 = vld [vmem:[#allocation5 + $0x1b4] ss:$8 sps:$4 sm:$0xff]   ;;  %v1436_v43 = vld [vmem:[#allocation5 + $0x80] ss:$8 sps:$4 sm:$0xff]   ;;  %v1413_v45 = vld [vmem:[#allocation5 + $0x1b0] ss:$8 sps:$4 sm:$0xff]  }
  0x46   :  { %654 = vmatprep.subr.bf16.mxu0 %v1375_v9  ;;  %678 = vmatprep.mubr.bf16.mxu0 %v106_v36  ;;  %v1438_v44 = vld [vmem:[#allocation5 + $0x94] ss:$8 sps:$4 sm:$0xff]   ;;  %v1416_v46 = vld [vmem:[#allocation5 + $0x1c4] ss:$8 sps:$4 sm:$0xff]   ;;  %v1443_v47 = vld [vmem:[#allocation5 + $0x90] ss:$8 sps:$4 sm:$0xff]  }
  0x47   :  { %580 = vmatpush1.bf16.msra.mxu1 %v1406_v20  ;;  %v1444_v48 = vld [vmem:[#allocation5 + $0xa4] ss:$8 sps:$4 sm:$0xff]   ;;  %v1419_v49 = vld [vmem:[#allocation5 + $0x1c0] ss:$8 sps:$4 sm:$0xff]   ;;  %v1422_v50 = vld [vmem:[#allocation5 + $0x1d4] ss:$8 sps:$4 sm:$0xff]  }
  0x48   :  { %581 = vmatprep.subr.bf16.mxu1 %v1408_v21  ;;  %v1446_v51 = vld [vmem:[#allocation5 + $0xa0] ss:$8 sps:$4 sm:$0xff]   ;;  %v1447_v52 = vld [vmem:[#allocation5 + $0xb4] ss:$8 sps:$4 sm:$0xff]   ;;  %v1425_v53 = vld [vmem:[#allocation5 + $0x1d0] ss:$8 sps:$4 sm:$0xff]  }
  0x49   :  { %655 = vmatpush1.bf16.msra.mxu0 %v1377_v12  ;;  %v1428_v54 = vld [vmem:[#allocation5 + $0x1e4] ss:$8 sps:$4 sm:$0xff]   ;;  %v69_v56 = vld [vmem:[#allocation2 + $0x30] sm:$0xff]  ;;  %v1431_v60 = vld [vmem:[#allocation5 + $0x1e0] ss:$8 sps:$4 sm:$0xff]  }
  0x4a   :  { %656 = vmatprep.subr.bf16.mxu0 %v1378_v15  ;;  %v64_v55 = vld [vmem:[#allocation2 + $0x8] sm:$0xff]  ;;  %v1449_v57 = vld [vmem:[#allocation5 + $0xb0] ss:$8 sps:$4 sm:$0xff]   ;;  %v1434_v61 = vld [vmem:[#allocation5 + $0x1f4] ss:$8 sps:$4 sm:$0xff]  }
  0x4b   :  { %582 = vmatpush1.bf16.msra.mxu1 %v1412_v24  ;;  %v104_v58 = vpack.c.bf16 %v69_v56, %v64_v55  ;;  %v1453_v59 = vld [vmem:[#allocation5 + $0xc4] ss:$8 sps:$4 sm:$0xff]   ;;  %v1455_v62 = vld [vmem:[#allocation5 + $0xc0] ss:$8 sps:$4 sm:$0xff]   ;;  %v1437_v63 = vld [vmem:[#allocation5 + $0x1f0] ss:$8 sps:$4 sm:$0xff]  }
  0x4c   :  { %583 = vmatprep.subr.bf16.mxu1 %v1414_v25  ;;  %v65_v0 = vld [vmem:[#allocation2 + $0x10] sm:$0xff]  ;;  %v70_v2 = vld [vmem:[#allocation2 + $0x38] sm:$0xff]  ;;  %v1442_v3 = vld [vmem:[#allocation5 + $0x204] ss:$8 sps:$4 sm:$0xff]  }
  0x4d   :  { %657 = vmatpush1.bf16.msra.mxu0 %v1380_v18  ;;  %605 = vmatprep.mubr.bf16.mxu1 %v104_v58  ;;  %v1456_v1 = vld [vmem:[#allocation5 + $0xd4] ss:$8 sps:$4 sm:$0xff]   ;;  %v76_v4 = vld [vmem:[#allocation2 + $0x68] sm:$0xff]  ;;  %v1458_v6 = vld [vmem:[#allocation5 + $0xd0] ss:$8 sps:$4 sm:$0xff]   ;;  %v105_v7 = vpack.c.bf16 %v70_v2, %v65_v0 }
  0x4e   :  { %658 = vmatprep.subr.bf16.mxu0 %v1381_v19  ;;  %v81_v5 = vld [vmem:[#allocation2 + $0x90] sm:$0xff]  ;;  %v1459_v8 = vld [vmem:[#allocation5 + $0xe4] ss:$8 sps:$4 sm:$0xff]   ;;  %v1440_v9 = vld [vmem:[#allocation5 + $0x200] ss:$8 sps:$4 sm:$0xff]  }
  0x4f   :  { %584 = vmatpush1.bf16.msra.mxu1 %v1418_v28  ;;  %v111_v10 = vpack.c.bf16 %v81_v5, %v76_v4  ;;  %v1452_v11 = vld [vmem:[#allocation5 + $0x214] ss:$8 sps:$4 sm:$0xff]   ;;  %v75_v12 = vld [vmem:[#allocation2 + $0x60] sm:$0xff]  ;;  %v80_v13 = vld [vmem:[#allocation2 + $0x88] sm:$0xff] }
  0x50   :  { %585 = vmatprep.subr.bf16.mxu1 %v1420_v29  ;;  %v1450_v14 = vld [vmem:[#allocation5 + $0x210] ss:$8 sps:$4 sm:$0xff]   ;;  %v1461_v15 = vld [vmem:[#allocation5 + $0xe0] ss:$8 sps:$4 sm:$0xff]   ;;  %v1465_v20 = vld [vmem:[#allocation5 + $0xf4] ss:$8 sps:$4 sm:$0xff]   ;;  %v110_v25 = vpack.c.bf16 %v80_v13, %v75_v12 }
  0x51   :  { %659 = vmatpush1.bf16.msra.mxu0 %v1383_v22  ;;  %v86_v16 = vld [vmem:[#allocation2 + $0xb8] sm:$0xff]  ;;  %v91_v17 = vld [vmem:[#allocation2 + $0xe0] sm:$0xff]  ;;  %v101_v36 = vld [vmem:[#allocation2 + $0x130] sm:$0xff] }
  0x52   :  { %660 = vmatprep.subr.bf16.mxu0 %v1386_v23  ;;  %v1462_v18 = vld [vmem:[#allocation5 + $0x224] ss:$8 sps:$4 sm:$0x3f]   ;;  %v1464_v19 = vld [vmem:[#allocation5 + $0x220] ss:$8 sps:$4 sm:$0x3f]   ;;  %v116_v28 = vpack.c.bf16 %v91_v17, %v86_v16 }
  0x53   :  { %586 = vmatpush1.bf16.msra.mxu1 %v1424_v32  ;;  %v1467_v21 = vld [vmem:[#allocation5 + $0xf0] ss:$8 sps:$4 sm:$0xff]   ;;  %v63_v22 = vld [vmem:[#allocation2] sm:$0xff]  ;;  %v68_v23 = vld [vmem:[#allocation2 + $0x28] sm:$0xff]  ;;  %v568_v29 = vsel %vm566_vm0, %v1464_v19, 0 }
  0x54   :  { %587 = vmatprep.subr.bf16.mxu1 %v1426_v35  ;;  %v74_v24 = vld [vmem:[#allocation2 + $0x58] sm:$0xff]  ;;  %v96_v35 = vld [vmem:[#allocation2 + $0x108] sm:$0xff]  ;;  %v67_v0 = vld [vmem:[#allocation2 + $0x20] sm:$0xff] }
  0x55   :  { %661 = vmatpush1.bf16.msra.mxu0 %v1389_v26  ;;  %v79_v26 = vld [vmem:[#allocation2 + $0x80] sm:$0xff]  ;;  %v90_v32 = vld [vmem:[#allocation2 + $0xd8] sm:$0xff]  ;;  %v93_v2 = vld [vmem:[#allocation2 + $0xf0] sm:$0xff] }
  0x56   :  { %662 = vmatprep.subr.bf16.mxu0 %v1392_v27  ;;  %v1470_v27 = vld [vmem:[#allocation7 + $0x4] ss:$8 sps:$4 sm:$0xff]   ;;  %v109_v33 = vpack.c.bf16 %v79_v26, %v74_v24  ;;  %v1468_v34 = vld [vmem:[#allocation7] ss:$8 sps:$4 sm:$0xff]   ;;  %v1483_v4 = vld [vmem:[#allocation7 + $0x50] ss:$8 sps:$4 sm:$0xff]  }
  0x57   :  { %588 = vmatpush1.bf16.msra.mxu1 %v1430_v39  ;;  %v78_v39 = vld [vmem:[#allocation2 + $0x78] sm:$0xff]  ;;  %v1489_v12 = vld [vmem:[#allocation7 + $0x70] ss:$8 sps:$4 sm:$0xff]   ;;  %v1497_v16 = vld [vmem:[#allocation7 + $0x94] ss:$8 sps:$4 sm:$0xff]  }
  0x58   :  { %589 = vmatprep.subr.bf16.mxu1 %v1432_v40  ;;  %v1471_v40 = vld [vmem:[#allocation7 + $0x10] ss:$8 sps:$4 sm:$0xff]   ;;  %v94_v56 = vld [vmem:[#allocation2 + $0xf8] sm:$0xff]  ;;  %v97_v24 = vld [vmem:[#allocation2 + $0x110] sm:$0xff] }
  0x59   :  { %663 = vmatpush1.bf16.msra.mxu0 %v1395_v30  ;;  %v103_v30 = vpack.c.bf16 %v68_v23, %v63_v22  ;;  %v1482_v58 = vld [vmem:[#allocation7 + $0x44] ss:$8 sps:$4 sm:$0xff]   ;;  %v87_v17 = vld [vmem:[#allocation2 + $0xc0] sm:$0xff]  ;;  %v1498_v22 = vld [vmem:[#allocation7 + $0xa0] ss:$8 sps:$4 sm:$0xff]  }
  0x5a   :  { %664 = vmatprep.subr.bf16.mxu0 %v1398_v31  ;;  %v85_v31 = vld [vmem:[#allocation2 + $0xb0] sm:$0xff]  ;;  %v1495_v19 = vld [vmem:[#allocation7 + $0x90] ss:$8 sps:$4 sm:$0xff]   ;;  %v1503_v23 = vld [vmem:[#allocation7 + $0xb4] ss:$8 sps:$4 sm:$0xff]  }
  0x5b   :  { %590 = vmatpush1.bf16.msra.mxu1 %v1436_v43  ;;  %v1476_v43 = vld [vmem:[#allocation7 + $0x24] ss:$8 sps:$4 sm:$0xff]   ;;  %v1501_v26 = vld [vmem:[#allocation7 + $0xb0] ss:$8 sps:$4 sm:$0xff]  }
  0x5c   :  { %591 = vmatprep.subr.bf16.mxu1 %v1438_v44  ;;  %v115_v44 = vpack.c.bf16 %v90_v32, %v85_v31  ;;  %v1507_v31 = vld [vmem:[#allocation7 + $0xd0] ss:$8 sps:$4 sm:$0xff]   ;;  %v1512_v32 = vld [vmem:[#allocation7 + $0xe4] ss:$8 sps:$4 sm:$0xff]  }
  0x5d   :  { %665 = vmatpush1.bf16.msra.mxu0 %v1401_v37  ;;  %v1473_v37 = vld [vmem:[#allocation7 + $0x14] ss:$8 sps:$4 sm:$0xff]  }
  0x5e   :  { %666 = vmatprep.subr.bf16.mxu0 %v1404_v38  ;;  %v73_v38 = vld [vmem:[#allocation2 + $0x50] sm:$0xff] }
  0x5f   :  { %592 = vmatpush1.bf16.msra.mxu1 %v1443_v47 }
  0x60   :  { %593 = vmatprep.subr.bf16.mxu1 %v1444_v48  ;;  %v1474_v48 = vld [vmem:[#allocation7 + $0x20] ss:$8 sps:$4 sm:$0xff]  }
  0x61   :  { %667 = vmatpush1.bf16.msra.mxu0 %v1407_v41  ;;  %v84_v41 = vld [vmem:[#allocation2 + $0xa8] sm:$0xff] }
  0x62   :  { %668 = vmatprep.subr.bf16.mxu0 %v1410_v42  ;;  %v89_v42 = vld [vmem:[#allocation2 + $0xd0] sm:$0xff] }
  0x63   :  { %594 = vmatpush1.bf16.msra.mxu1 %v1446_v51  ;;  %v114_v47 = vpack.c.bf16 %v89_v42, %v84_v41  ;;  %v100_v51 = vld [vmem:[#allocation2 + $0x128] sm:$0xff] }
  0x64   :  { %595 = vmatprep.subr.bf16.mxu1 %v1447_v52  ;;  %v83_v52 = vld [vmem:[#allocation2 + $0xa0] sm:$0xff] }
  0x65   :  { %669 = vmatpush1.bf16.msra.mxu0 %v1413_v45  ;;  %v121_v45 = vpack.c.bf16 %v101_v36, %v96_v35  ;;  %v1513_v35 = vld [vmem:[#allocation7 + $0xf0] ss:$8 sps:$4 sm:$0xff]  }
  0x66   :  { %670 = vmatprep.subr.bf16.mxu0 %v1416_v46  ;;  %v108_v46 = vpack.c.bf16 %v78_v39, %v73_v38  ;;  %v195_v39 = vlaneseq }
  0x67   :  { %596 = vmatpush1.bf16.msra.mxu1 %v1449_v57  ;;  %v99_v57 = vld [vmem:[#allocation2 + $0x120] sm:$0xff] }
  0x68   :  { %597 = vmatprep.subr.bf16.mxu1 %v1453_v59  ;;  %v1695_v41 = vshrl.u32 %v195_v39, 7 }
  0x69   :  { %671 = vmatpush1.bf16.msra.mxu0 %v1419_v49  ;;  %v1479_v49 = vld [vmem:[#allocation7 + $0x34] ss:$8 sps:$4 sm:$0xff]  }
  0x6a   :  { %672 = vmatprep.subr.bf16.mxu0 %v1422_v50  ;;  %v95_v50 = vld [vmem:[#allocation2 + $0x100] sm:$0xff] }
  0x6b   :  { %598 = vmatpush1.bf16.msra.mxu1 %v1455_v62  ;;  %v120_v55 = vpack.c.bf16 %v100_v51, %v95_v50  ;;  %v1485_v62 = vld [vmem:[#allocation7 + $0x54] ss:$8 sps:$4 sm:$0xff]  }
  0x6c   :  { %599 = vmatprep.subr.bf16.mxu1 %v1456_v1  ;;  %v72_v1 = vld [vmem:[#allocation2 + $0x48] sm:$0xff] }
  0x6d   :  { %673 = vmatpush1.bf16.msra.mxu0 %v1425_v53  ;;  %v88_v53 = vld [vmem:[#allocation2 + $0xc8] sm:$0xff]  ;;  %v107_v5 = vpack.c.bf16 %v72_v1, %v67_v0 }
  0x6e   :  { %674 = vmatprep.subr.bf16.mxu0 %v1428_v54  ;;  %v1477_v54 = vld [vmem:[#allocation7 + $0x30] ss:$8 sps:$4 sm:$0xff]   ;;  %v113_v59 = vpack.c.bf16 %v88_v53, %v83_v52 }
  0x6f   :  { %600 = vmatpush1.bf16.msra.mxu1 %v1458_v6  ;;  %v1488_v6 = vld [vmem:[#allocation7 + $0x64] ss:$8 sps:$4 sm:$0xff]  }
  0x70   :  { %601 = vmatprep.subr.bf16.mxu1 %v1459_v8  ;;  %v1486_v8 = vld [vmem:[#allocation7 + $0x60] ss:$8 sps:$4 sm:$0xff]  }
  0x71   :  { %675 = vmatpush1.bf16.msra.mxu0 %v1431_v60  ;;  %v119_v60 = vpack.c.bf16 %v99_v57, %v94_v56 }
  0x72   :  { %676 = vmatprep.subr.bf16.mxu0 %v1434_v61  ;;  %v1480_v61 = vld [vmem:[#allocation7 + $0x40] ss:$8 sps:$4 sm:$0xff]  }
  0x73   :  { %602 = vmatpush1.bf16.msra.mxu1 %v1461_v15  ;;  %v1492_v15 = vld [vmem:[#allocation7 + $0x80] ss:$8 sps:$4 sm:$0xff]  }
  0x74   :  { %603 = vmatprep.subr.bf16.mxu1 %v1465_v20 }
  0x75   :  { %677 = vmatpush1.bf16.msra.mxu0 %v1437_v63  ;;  %v1617_v63 = vmov 0  }
  0x76   :  { %719 = vmatprep.subr.bf16.mxu0 %v1442_v3  ;;  %v98_v3 = vld [vmem:[#allocation2 + $0x118] sm:$0xff] }
  0x77   :  { %604 = vmatpush1.bf16.msra.mxu1 %v1467_v21  ;;  %v1500_v21 = vld [vmem:[#allocation7 + $0xa4] ss:$8 sps:$4 sm:$0xff]  }
  0x78   :  { %679 = vmatmul.mubr.bf16.vlgmr.msra.gmra.mrb[0].mxu0 %v105_v7  ;;  %1036 = vmatprep.subr.bf16.mxu1 %v1470_v27  ;;  %v118_v7 = vpack.c.bf16 %v98_v3, %v93_v2 }
  0x79   :  { %720 = vmatpush1.bf16.msra.mxu0 %v1440_v9  ;;  %688 = vmatprep.mubr.bf16.mxu0 %v111_v10  ;;  %v1491_v9 = vld [vmem:[#allocation7 + $0x74] ss:$8 sps:$4 sm:$0xff]   ;;  %v77_v10 = vld [vmem:[#allocation2 + $0x70] sm:$0xff] }
  0x7a   :  { %721 = vmatprep.subr.bf16.mxu0 %v1452_v11  ;;  %606 = vmatmul.mubr.bf16.vlgmr.msra.gmra.mrb[0].mxu1 %v103_v30  ;;  %v82_v11 = vld [vmem:[#allocation2 + $0x98] sm:$0xff]  ;;  %v1509_v30 = vld [vmem:[#allocation7 + $0xd4] ss:$8 sps:$4 sm:$0xff]  }
  0x7b   :  { %615 = vmatprep.mubr.bf16.mxu1 %v109_v33  ;;  %1037 = vmatpush1.bf16.msra.mxu1 %v1468_v34  ;;  %v112_v13 = vpack.c.bf16 %v82_v11, %v77_v10  ;;  %v1510_v33 = vld [vmem:[#allocation7 + $0xe0] ss:$8 sps:$4 sm:$0xff]   ;;  %v1515_v34 = vld [vmem:[#allocation7 + $0xf4] ss:$8 sps:$4 sm:$0xff]  }
  0x7c   :  { %1038 = vmatprep.subr.bf16.mxu1 %v1473_v37 }
  0x7d   :  { %722 = vmatpush1.bf16.msra.mxu0 %v1450_v14  ;;  %v1494_v14 = vld [vmem:[#allocation7 + $0x84] ss:$8 sps:$4 sm:$0xff]  }
  0x7e   :  { %1253 = vmatprep.subr.msk.bf16.mxu0 %vm566_vm0, %v1462_v18  ;;  %v92_v18 = vld [vmem:[#allocation2 + $0xe8] sm:$0xff] }
  0x7f   :  { %1039 = vmatpush1.bf16.msra.mxu1 %v1471_v40  ;;  %v117_v20 = vpack.c.bf16 %v92_v18, %v87_v17 }
  0x80   :  { %689 = vmatmul.mubr.bf16.gmra.mrb[4].mxu0 %v110_v25  ;;  %1040 = vmatprep.subr.bf16.mxu1 %v1476_v43  ;;  %v102_v25 = vld [vmem:[#allocation2 + $0x138] sm:$0xff] }
  0x81   :  { %698 = vmatprep.mubr.bf16.mxu0 %v116_v28  ;;  %724 = vmatpush1.bf16.msra.mxu0 %v568_v29  ;;  %v122_v27 = vpack.c.bf16 %v102_v25, %v97_v24  ;;  %v1504_v28 = vld [vmem:[#allocation7 + $0xc0] ss:$8 sps:$4 sm:$0xff]   ;;  %v1506_v29 = vld [vmem:[#allocation7 + $0xc4] ss:$8 sps:$4 sm:$0xff]  }
  0x82   :  { %616 = vmatmul.mubr.bf16.gmra.mrb[4].mxu1 %v108_v46 }
  0x83   :  { %625 = vmatprep.mubr.bf16.mxu1 %v114_v47  ;;  %1041 = vmatpush1.bf16.msra.mxu1 %v1474_v48  ;;  %v193_v47 = vld [vmem:[%s1750_s2] sm:$0x3]  ;;  %v201_v48 = vsub.s32 1, %v1695_v41 }
  0x84   :  { %1042 = vmatprep.subr.bf16.mxu1 %v1479_v49 }
  0x85   :  { %v1708_v50 = vrot.slane %v193_v47, %v201_v48 }
  0x87   :  { %1043 = vmatpush1.bf16.msra.mxu1 %v1477_v54 }
  0x88   :  { %699 = vmatmul.mubr.bf16.gmra.mrb[8].mxu0 %v115_v44  ;;  %1044 = vmatprep.subr.bf16.mxu1 %v1482_v58 }
  0x89   :  { %708 = vmatprep.mubr.bf16.mxu0 %v121_v45  ;;  %v197_v45 = vsub.s32 0, %v1695_v41 }
  0x8a   :  { %626 = vmatmul.mubr.bf16.gmra.mrb[8].mxu1 %v113_v59 }
  0x8b   :  { %635 = vmatprep.mubr.bf16.mxu1 %v119_v60  ;;  %1045 = vmatpush1.bf16.msra.mxu1 %v1480_v61  ;;  %v1704_v49 = vrot.slane %v193_v47, %v197_v45 }
  0x8c   :  { %1046 = vmatprep.subr.bf16.mxu1 %v1485_v62 }
  0x8f   :  { %1047 = vmatpush1.bf16.msra.mxu1 %v1483_v4 }
  0x90   :  { %709 = vmatmul.mubr.bf16.gmra.mrb[12].mxu0 %v120_v55  ;;  %1048 = vmatprep.subr.bf16.mxu1 %v1488_v6 }
  0x91   :  { %751 = vmatprep.mubr.bf16.mxu0 %v1617_v63 }
  0x92   :  { %636 = vmatmul.mubr.bf16.gmra.mrb[12].mxu1 %v118_v7 }
  0x93   :  { %1049 = vmatpush1.bf16.msra.mxu1 %v1486_v8 }
  0x94   :  { %1050 = vmatprep.subr.bf16.mxu1 %v1491_v9 }
  0x97   :  { %1051 = vmatpush1.bf16.msra.mxu1 %v1489_v12 }
  0x98   :  { %1254 = vmatmul.mubr.msk.bf16.vlgmr.msra.gmra.mrb[0].mxu0 %vm553_vm1, %v107_v5  ;;  %1052 = vmatprep.subr.bf16.mxu1 %v1494_v14 }
  0x99   :  { %761 = vmatprep.mubr.bf16.mxu0 %v1617_v63 }
  0x9b   :  { %1053 = vmatpush1.bf16.msra.mxu1 %v1492_v15 }
  0x9c   :  { %1054 = vmatprep.subr.bf16.mxu1 %v1497_v16 }
  0x9f   :  { %1055 = vmatpush1.bf16.msra.mxu1 %v1495_v19 }
  0xa0   :  { %1255 = vmatmul.mubr.msk.bf16.gmra.mrb[4].mxu0 %vm553_vm1, %v112_v13  ;;  %1056 = vmatprep.subr.bf16.mxu1 %v1500_v21 }
  0xa1   :  { %771 = vmatprep.mubr.bf16.mxu0 %v1617_v63 }
  0xa3   :  { %1057 = vmatpush1.bf16.msra.mxu1 %v1498_v22 }
  0xa4   :  { %1058 = vmatprep.subr.bf16.mxu1 %v1503_v23 }
  0xa7   :  { %1059 = vmatpush1.bf16.msra.mxu1 %v1501_v26 }
  0xa8   :  { %1256 = vmatmul.mubr.msk.bf16.gmra.mrb[8].mxu0 %vm553_vm1, %v117_v20  ;;  %1060 = vmatprep.subr.bf16.mxu1 %v1506_v29 }
  0xa9   :  { %781 = vmatprep.mubr.bf16.mxu0 %v1617_v63 }
  0xab   :  { %1061 = vmatpush1.bf16.msra.mxu1 %v1504_v28 }
  0xac   :  { %1062 = vmatprep.subr.bf16.mxu1 %v1509_v30 }
  0xaf   :  { %1063 = vmatpush1.bf16.msra.mxu1 %v1507_v31 }
  0xb0   :  { %1257 = vmatmul.mubr.msk.bf16.gmra.mrb[12].mxu0 %vm553_vm1, %v122_v27  ;;  %1064 = vmatprep.subr.bf16.mxu1 %v1512_v32 }
  0xb3   :  { %1065 = vmatpush1.bf16.msra.mxu1 %v1510_v33 }
  0xb4   :  { %1066 = vmatprep.subr.bf16.mxu1 %v1515_v34 }
  0xb7   :  { %1067 = vmatpush1.bf16.msra.mxu1 %v1513_v35 }
 0x14d   :  { %v607_v36 = vpop.f32.mrb[0].mxu1 }
 0x14e   :  { %v609_v37 = vpop.f32.mrb[1].mxu1  ;;  %v608_v54 = vadd.f32 %v607_v36, %v1704_v49 }
 0x14f   :  { %v611_v38 = vpop.f32.mrb[2].mxu1  ;;  %v610_v56 = vadd.f32 %v609_v37, %v1708_v50 }
 0x150   :  { %v613_v40 = vpop.f32.mrb[3].mxu1  ;;  %v612_v58 = vadd.f32 %v611_v38, %v1704_v49 }
 0x151   :  { %v614_v61 = vadd.f32 %v613_v40, %v1708_v50 }
 0x155   :  { %v617_v42 = vpop.f32.mrb[4].mxu1 }
 0x156   :  { %v619_v43 = vpop.f32.mrb[5].mxu1  ;;  %v618_v9 = vadd.f32 %v617_v42, %v1704_v49 }
 0x157   :  { %v621_v44 = vpop.f32.mrb[6].mxu1  ;;  %v620_v12 = vadd.f32 %v619_v43, %v1708_v50 }
 0x158   :  { %v623_v46 = vpop.f32.mrb[7].mxu1  ;;  %v622_v19 = vadd.f32 %v621_v44, %v1704_v49 }
 0x159   :  { %v624_v22 = vadd.f32 %v623_v46, %v1708_v50 }
 0x15d   :  { %v627_v51 = vpop.f32.mrb[8].mxu1 }
 0x15e   :  { %v629_v52 = vpop.f32.mrb[9].mxu1  ;;  %v628_v32 = vadd.f32 %v627_v51, %v1704_v49 }
 0x15f   :  { %v631_v53 = vpop.f32.mrb[10].mxu1  ;;  %v630_v34 = vadd.f32 %v629_v52, %v1708_v50 }
 0x160   :  { %v633_v55 = vpop.f32.mrb[11].mxu1  ;;  %v632_v40 = vadd.f32 %v631_v53, %v1704_v49 }
 0x161   :  { %v634_v46 = vadd.f32 %v633_v55, %v1708_v50 }
 0x165   :  { %v637_v0 = vpop.f32.mrb[12].mxu1 }
 0x166   :  { %v639_v4 = vpop.f32.mrb[13].mxu1 }
 0x167   :  { %v641_v7 = vpop.f32.mrb[14].mxu1  ;;  %v640_v53 = vadd.f32 %v639_v4, %v1708_v50 }
 0x168   :  { %v643_v10 = vpop.f32.mrb[15].mxu1 }
 0x16b   :  { %v753_v57 = vpop.f32.mrb[0].mxu0 }
 0x16c   :  { %v1307_v59 = vadd.f32 %v753_v57, %v608_v54  ;;  %v755_v60 = vpop.f32.mrb[1].mxu0 }
 0x16d   :  { %v1309_v62 = vadd.f32 %v755_v60, %v610_v56  ;;  %v757_v63 = vpop.f32.mrb[2].mxu0 }
 0x16e   :  { %v792_v1 = vmul.f32 0.2, %v1307_v59  ;;  %v1311_v2 = vadd.f32 %v757_v63, %v612_v58  ;;  %v759_v3 = vpop.f32.mrb[3].mxu0 }
 0x16f   :  { %v793_v5 = vmul.f32 0.2, %v1309_v62  ;;  %v1313_v6 = vadd.f32 %v759_v3, %v614_v61  ;;  %v638_v61 = vadd.f32 %v637_v0, %v1704_v49 }
 0x170   :  { %v794_v8 = vmul.f32 0.2, %v1311_v2  ;;  %v808_v13 = vmax.f32 %v1307_v59, %v792_v1 }
 0x171   :  { %v795_v11 = vmul.f32 0.2, %v1313_v6  ;;  %v809_v15 = vmax.f32 %v1309_v62, %v793_v5  ;;  %v642_v5 = vadd.f32 %v641_v7, %v1704_v49 }
 0x172   :  { %v810_v14 = vmax.f32 %v1311_v2, %v794_v8 }
 0x173   :  { %v811_v16 = vmax.f32 %v1313_v6, %v795_v11  ;;  %v763_v17 = vpop.f32.mrb[4].mxu0  ;;  %v644_v11 = vadd.f32 %v643_v10, %v1708_v50  ;;  %v864_v50 = vld [vmem:[%s1752_s4] sm:$0x3]  ;;  %s1618_s4 = smov [#allocation8]  }
 0x174   :  { %v824_v18 = vpack.c.bf16 %v810_v14, %v808_v13  ;;  %v1315_v20 = vadd.f32 %v763_v17, %v618_v9  ;;  %v765_v21 = vpop.f32.mrb[5].mxu0  ;;  %v869_v10 = vrot.slane %v864_v50, %v197_v45  ;;  %s1170_s10 = sshll.u32 %s1618_s4, 4  ;;  %s1171_s10 = int_to_ptr.vmem [resolvable:$true] %s1170_s10 }
 0x175   :  { %v1317_v23 = vadd.f32 %v765_v21, %v620_v12  ;;  %v767_v24 = vpop.f32.mrb[6].mxu0  ;;  %v825_v25 = vpack.c.bf16 %v811_v16, %v809_v15  ;;  %s1582_s11 = scalar_lea.vmem %s1171_s10, 1024  ;;  %p1587_p11 = scmp.lt.s32.totalorder %s1171_s10, %s1171_s10 }
 0x176   :  { %v796_v26 = vmul.f32 0.2, %v1315_v20  ;;  %v1319_v27 = vadd.f32 %v767_v24, %v622_v19  ;;  %v769_v28 = vpop.f32.mrb[7].mxu0  ;;  %v873_v24 = vrot.slane %v864_v50, %v201_v48  ;;  %p1583_p10 = scmp.ne.s32.totalorder %s1171_s10, %s1582_s11  ;;  %p1588_p12 = scmp.lt.s32.totalorder %s1582_s11, %s1582_s11 }
 0x177   :  { %v797_v29 = vmul.f32 0.2, %v1317_v23  ;;  %v1321_v30 = vadd.f32 %v769_v28, %v624_v22  ;;  %1068 = vmatprep.mubr.bf16.mxu1 %v825_v25 }
 0x178   :  { %v798_v31 = vmul.f32 0.2, %v1319_v27  ;;  %1069 = vmatmul.mubr.bf16.vlgmr.msra.gmra.mrb[16].mxu1 %v824_v18  ;;  %v812_v35 = vmax.f32 %v1315_v20, %v796_v26  ;;  %p1589_p13 = por %p1588_p12, %p1587_p11 }
 0x179   :  { %v799_v33 = vmul.f32 0.2, %v1321_v30  ;;  %v813_v37 = vmax.f32 %v1317_v23, %v797_v29 }
 0x17a   :  { %v814_v36 = vmax.f32 %v1319_v27, %v798_v31  ;;  %p1590_p0 = pnand %p1589_p13, %p1583_p10 }
 0x17b   :  { %v815_v38 = vmax.f32 %v1321_v30, %v799_v33  ;;  %v773_v39 = vpop.f32.mrb[8].mxu0 }
 0x17c   :  { %v1323_v42 = vadd.f32 %v773_v39, %v628_v32  ;;  %v775_v43 = vpop.f32.mrb[9].mxu0  ;;  %v826_v44 = vpack.c.bf16 %v814_v36, %v812_v35 }
 0x17d   :  { %v1325_v47 = vadd.f32 %v775_v43, %v630_v34  ;;  %v777_v54 = vpop.f32.mrb[10].mxu0  ;;  %v827_v56 = vpack.c.bf16 %v815_v38, %v813_v37 }
 0x17e   :  { %v800_v51 = vmul.f32 0.2, %v1323_v42  ;;  %v1327_v57 = vadd.f32 %v777_v54, %v632_v40  ;;  %v779_v58 = vpop.f32.mrb[11].mxu0 }
 0x17f   :  { %v801_v59 = vmul.f32 0.2, %v1325_v47  ;;  %v1329_v52 = vadd.f32 %v779_v58, %v634_v46  ;;  %1078 = vmatprep.mubr.bf16.mxu1 %v827_v56 }
 0x180   :  { %v802_v60 = vmul.f32 0.2, %v1327_v57  ;;  %1079 = vmatmul.mubr.bf16.gmra.mrb[20].mxu1 %v826_v44  ;;  %v816_v63 = vmax.f32 %v1323_v42, %v800_v51 }
 0x181   :  { %v803_v62 = vmul.f32 0.2, %v1329_v52  ;;  %v817_v2 = vmax.f32 %v1325_v47, %v801_v59 }
 0x182   :  { %v818_v1 = vmax.f32 %v1327_v57, %v802_v60 }
 0x183   :  { %v819_v55 = vmax.f32 %v1329_v52, %v803_v62  ;;  %v783_v3 = vpop.f32.mrb[12].mxu0 }
 0x184   :  { %v1331_v6 = vadd.f32 %v783_v3, %v638_v61  ;;  %v785_v8 = vpop.f32.mrb[13].mxu0  ;;  %v828_v9 = vpack.c.bf16 %v818_v1, %v816_v63 }
 0x185   :  { %v1333_v12 = vadd.f32 %v785_v8, %v640_v53  ;;  %v787_v13 = vpop.f32.mrb[14].mxu0  ;;  %v829_v14 = vpack.c.bf16 %v819_v55, %v817_v2 }
 0x186   :  { %v804_v0 = vmul.f32 0.2, %v1331_v6  ;;  %v1335_v15 = vadd.f32 %v787_v13, %v642_v5  ;;  %v789_v16 = vpop.f32.mrb[15].mxu0 }
 0x187   :  { %v805_v17 = vmul.f32 0.2, %v1333_v12  ;;  %v1337_v4 = vadd.f32 %v789_v16, %v644_v11  ;;  %1088 = vmatprep.mubr.bf16.mxu1 %v829_v14 }
 0x188   :  { %v806_v18 = vmul.f32 0.2, %v1335_v15  ;;  %1089 = vmatmul.mubr.bf16.gmra.mrb[24].mxu1 %v828_v9  ;;  %v820_v20 = vmax.f32 %v1331_v6, %v804_v0 }
 0x189   :  { %v807_v19 = vmul.f32 0.2, %v1337_v4  ;;  %v821_v49 = vmax.f32 %v1333_v12, %v805_v17 }
 0x18a   :  { %v822_v21 = vmax.f32 %v1335_v15, %v806_v18 }
 0x18b   :  { %v823_v7 = vmax.f32 %v1337_v4, %v807_v19 }
 0x18c   :  { %v830_v22 = vpack.c.bf16 %v822_v21, %v820_v20 }
 0x18d   :  { %v831_v23 = vpack.c.bf16 %v823_v7, %v821_v49 }
 0x18f   :  { %1098 = vmatprep.mubr.bf16.mxu1 %v831_v23 }
 0x190   :  { %1099 = vmatmul.mubr.bf16.gmra.mrb[28].mxu1 %v830_v22 }
 0x24b   :  { %v1070_v25 = vpop.f32.mrb[16].mxu1 }
 0x24c   :  { %v1071_v26 = vadd.f32 %v1070_v25, %v869_v10  ;;  %v1072_v27 = vpop.f32.mrb[17].mxu1 }
 0x24d   :  { %v1073_v28 = vadd.f32 %v1072_v27, %v873_v24  ;;  %v1074_v29 = vpop.f32.mrb[18].mxu1 }
 0x24e   :  { %v1075_v30 = vadd.f32 %v1074_v29, %v869_v10  ;;  %v1076_v31 = vpop.f32.mrb[19].mxu1 }
 0x24f   :  { %v1298_v32 = vpack.c.bf16 %v1073_v28, %v1071_v26  ;;  %v1077_v33 = vadd.f32 %v1076_v31, %v873_v24 }
 0x251   :  { %1157 = vst [vmem:[#allocation8] sm:$0xff] %v1298_v32  ;;  %v1299_v34 = vpack.c.bf16 %v1077_v33, %v1075_v30 }
 0x253   :  { %1158 = vst [vmem:[#allocation8 + $0x8] sm:$0xff] %v1299_v34  ;;  %v1080_v35 = vpop.f32.mrb[20].mxu1 }
 0x254   :  { %v1081_v36 = vadd.f32 %v1080_v35, %v869_v10  ;;  %v1082_v37 = vpop.f32.mrb[21].mxu1 }
 0x255   :  { %v1083_v38 = vadd.f32 %v1082_v37, %v873_v24  ;;  %v1084_v45 = vpop.f32.mrb[22].mxu1 }
 0x256   :  { %v1085_v39 = vadd.f32 %v1084_v45, %v869_v10  ;;  %v1086_v41 = vpop.f32.mrb[23].mxu1 }
 0x257   :  { %v1300_v48 = vpack.c.bf16 %v1083_v38, %v1081_v36  ;;  %v1087_v40 = vadd.f32 %v1086_v41, %v873_v24 }
 0x259   :  { %1159 = vst [vmem:[#allocation8 + $0x10] sm:$0xff] %v1300_v48  ;;  %v1301_v42 = vpack.c.bf16 %v1087_v40, %v1085_v39 }
 0x25b   :  { %1160 = vst [vmem:[#allocation8 + $0x18] sm:$0xff] %v1301_v42  ;;  %v1090_v43 = vpop.f32.mrb[24].mxu1 }
 0x25c   :  { %v1091_v44 = vadd.f32 %v1090_v43, %v869_v10  ;;  %v1092_v46 = vpop.f32.mrb[25].mxu1 }
 0x25d   :  { %v1093_v47 = vadd.f32 %v1092_v46, %v873_v24  ;;  %v1094_v54 = vpop.f32.mrb[26].mxu1 }
 0x25e   :  { %v1095_v56 = vadd.f32 %v1094_v54, %v869_v10  ;;  %v1096_v51 = vpop.f32.mrb[27].mxu1 }
 0x25f   :  { %v1302_v57 = vpack.c.bf16 %v1093_v47, %v1091_v44  ;;  %v1097_v58 = vadd.f32 %v1096_v51, %v873_v24 }
 0x261   :  { %1161 = vst [vmem:[#allocation8 + $0x20] sm:$0xff] %v1302_v57  ;;  %v1303_v59 = vpack.c.bf16 %v1097_v58, %v1095_v56 }
 0x263   :  { %1162 = vst [vmem:[#allocation8 + $0x28] sm:$0xff] %v1303_v59  ;;  %v1100_v52 = vpop.f32.mrb[28].mxu1 }
 0x264   :  { %v1101_v60 = vadd.f32 %v1100_v52, %v869_v10  ;;  %v1102_v61 = vpop.f32.mrb[29].mxu1 }
 0x265   :  { %v1103_v62 = vadd.f32 %v1102_v61, %v873_v24  ;;  %v1104_v53 = vpop.f32.mrb[30].mxu1 }
 0x266   :  { %v1105_v63 = vadd.f32 %v1104_v53, %v869_v10  ;;  %v1106_v1 = vpop.f32.mrb[31].mxu1 }
 0x267   :  { %v1304_v2 = vpack.c.bf16 %v1103_v62, %v1101_v60  ;;  %v1107_v55 = vadd.f32 %v1106_v1, %v873_v24 }
 0x269   :  { %1163 = vst [vmem:[#allocation8 + $0x30] sm:$0xff] %v1304_v2  ;;  %v1305_v3 = vpack.c.bf16 %v1107_v55, %v1105_v63 }
 0x26b   :  { %1164 = vst [vmem:[#allocation8 + $0x38] sm:$0xff] %v1305_v3 }
 0x26c   :  { %1593 = shalt.err (!%p1590_p0)
}
 0x26d   :  { %s1594_s14 = scalar_lea.hbm %s1753_s5, 1024 }
 0x26e   :  { %p1595_p1 = scmp.ne.s32.totalorder %s1753_s5, %s1594_s14  ;;  %p1598_p2 = scmp.lt.u32.totalorder %s1594_s14, %s1753_s5 }
 0x270   :  { %p1600_p3 = pnand %p1598_p2, %p1595_p1 }
 0x272   :  { %1603 = shalt.err (!%p1600_p3)
}
 0x273   :  { %1176 = dma.vmem_to_hbm [thread:$0]  %s1171_s10, 1024, %s1753_s5, [#allocation4], %s1611_s28, %s1611_s28, %s1612_s29  }
 0x274   :  { %1608 = dma.done.wait [#allocation4], 1024  }
 0x275   :  { %1609 = vsyncadd [#allocation4], 4294966272 }
 0x276   :  { %1180 = vsyncpa [#allocation3], 1 }
 0x277   :  { %1181 = vsyncpa [#allocation6], 1 }
 0x278   :  { %1182 = vsyncpa [#allocation4], 1 }

</bundles_post_ra>
